<compile_context>
chip_gen: v7x
topology: tpu7x:2x2x1
jax: 0.10.0
libtpu: 0.0.40
codegen_flags: <defaults>
</compile_context>

<pallas_src>
import jax
import jax.numpy as jnp
import numpy as np
from jax.experimental import pallas as pl
from jax.experimental.pallas import tpu as pltpu

# ----- model config (mirrors the nn.Module) ----------------------------------
BANK_DIM = 32                  # config.bank_dim
STRUCT_MAX = 4                 # config.otmap_struct_max
SEQ = STRUCT_MAX * 2           # tokens per sample through map_linear_1
BS = 2                         # demo batch size

H1, H2, H3 = 512, 128, 32      # map_linear_1: dim -> 512 -> 128 -> 32
OUT = 2                        # map_linear_2: 32*SEQ -> 2

# ----- packed parameter slab layout (single 128-lane-wide f32 buffer) --------
PACK_COLS = 128
NCHUNK = H1 // PACK_COLS       # layer-1/2 handled in 4 chunks of 128 hidden dims
assert H1 % PACK_COLS == 0 and H2 == PACK_COLS
assert SEQ & (SEQ - 1) == 0 and OUT & (OUT - 1) == 0   # pow2 -> bit-trick masks
SEQ_SHIFT = SEQ.bit_length() - 1
OUT_SHIFT = OUT.bit_length() - 1

OFF_W1 = 0                            # NCHUNK chunks of (BANK_DIM, 128)
OFF_B1 = OFF_W1 + NCHUNK * BANK_DIM   # NCHUNK rows of (1, 128)
OFF_W2 = OFF_B1 + NCHUNK              # (H1, 128)
OFF_B2 = OFF_W2 + H1                  # (1, 128)
OFF_W3 = OFF_B2 + 1                   # (H2, H3)       in cols 0:H3
OFF_B3 = OFF_W3 + H2                  # (1, H3)
OFF_W4 = OFF_B3 + 1                   # (H3, SEQ*OUT)  "W4T", cols 0:SEQ*OUT
OFF_B4 = OFF_W4 + H3                  # (1, OUT)
PACK_ROWS = ((OFF_B4 + 1 + 7) // 8) * 8

MAX_BATCH_TILE = 16            # 16 samples * SEQ = 128 MXU rows per grid step


def map_model_kernel(x_ref, p_ref, out_ref):
    """Whole MapModel forward for one batch tile, entirely in VMEM.

    x_ref  : (BT*SEQ, BANK_DIM)   pre-flattened tokens (row index = b*SEQ + s)
    p_ref  : (PACK_ROWS, 128)     packed weights/biases (offsets above)
    out_ref: (BT, OUT)
    """
    f32 = jnp.float32
    x = x_ref[...]
    rows = x.shape[0]              # BT * SEQ
    bt = out_ref.shape[0]          # samples in this tile

    # ---- layers 1 + 2: the 512-wide hidden dim is processed in 128-column
    #      chunks so everything stays 128-lane aligned in the packed slab. ----
    acc2 = jnp.zeros((rows, H2), f32)
    for k in range(NCHUNK):
        w1k = p_ref[OFF_W1 + k * BANK_DIM:OFF_W1 + (k + 1) * BANK_DIM, :]
        b1k = p_ref[OFF_B1 + k:OFF_B1 + k + 1, :]
        w2k = p_ref[OFF_W2 + k * PACK_COLS:OFF_W2 + (k + 1) * PACK_COLS, :]
        h1k = jnp.dot(x, w1k, preferred_element_type=f32) + b1k
        acc2 = acc2 + jnp.dot(h1k, w2k, preferred_element_type=f32)
    h2 = acc2 + p_ref[OFF_B2:OFF_B2 + 1, :]                      # (rows, H2)

    # ---- layer 3 -------------------------------------------------------------
    w3 = p_ref[OFF_W3:OFF_W3 + H2, 0:H3]
    b3 = p_ref[OFF_B3:OFF_B3 + 1, 0:H3]
    h3 = jnp.dot(h2, w3, preferred_element_type=f32) + b3        # (rows, H3)

    # ---- flatten + final Linear, relayout-free -------------------------------
    # PyTorch: out[b] = concat_s(h3[b, s, :]) @ W4 + b4. Equivalent without the
    # lane-crossing (rows, H3) -> (BT, SEQ*H3) reshape:
    #   P[r, s*OUT+o] = h3[r, :] . W4[s*H3:(s+1)*H3, o]   (single 2D dot, W4T)
    #   keep only the row's own-token columns             (tok_mask)
    #   fold OUT-strided columns together                 (col_pool matmul)
    #   sum the SEQ rows belonging to each sample         (row_pool matmul)
    w4t = p_ref[OFF_W4:OFF_W4 + H3, 0:SEQ * OUT]                 # (H3, SEQ*OUT)
    b4 = p_ref[OFF_B4:OFF_B4 + 1, 0:OUT]                         # (1, OUT)
    p_all = jnp.dot(h3, w4t, preferred_element_type=f32)         # (rows, SEQ*OUT)

    r_idx = jax.lax.broadcasted_iota(jnp.int32, (rows, SEQ * OUT), 0)
    c_idx = jax.lax.broadcasted_iota(jnp.int32, (rows, SEQ * OUT), 1)
    tok_mask = jnp.where((r_idx & (SEQ - 1)) == (c_idx >> OUT_SHIFT), 1.0, 0.0)
    p_sel = p_all * tok_mask

    ci = jax.lax.broadcasted_iota(jnp.int32, (SEQ * OUT, OUT), 0)
    oi = jax.lax.broadcasted_iota(jnp.int32, (SEQ * OUT, OUT), 1)
    col_pool = jnp.where((ci & (OUT - 1)) == oi, 1.0, 0.0)       # (SEQ*OUT, OUT)
    row_sum = jnp.dot(p_sel, col_pool, preferred_element_type=f32)  # (rows, OUT)

    bi = jax.lax.broadcasted_iota(jnp.int32, (bt, rows), 0)
    ri = jax.lax.broadcasted_iota(jnp.int32, (bt, rows), 1)
    row_pool = jnp.where((ri >> SEQ_SHIFT) == bi, 1.0, 0.0)      # (bt, rows)
    out_ref[...] = jnp.dot(row_pool, row_sum, preferred_element_type=f32) + b4


def pack_params(params):
    """Pack all weights/biases into one lane-dense (PACK_ROWS, 128) f32 slab."""
    w1, b1, w2, b2, w3, b3, w4, b4 = params

    def pad_cols(a):
        return jnp.pad(a, ((0, 0), (0, PACK_COLS - a.shape[1])))

    pieces = []
    for k in range(NCHUNK):                       # w1 column chunks (32, 128)
        pieces.append(w1[:, k * PACK_COLS:(k + 1) * PACK_COLS])
    for k in range(NCHUNK):                       # b1 column chunks (1, 128)
        pieces.append(b1[:, k * PACK_COLS:(k + 1) * PACK_COLS])
    pieces += [w2, b2, pad_cols(w3), pad_cols(b3)]
    # W4T[d, s*OUT + o] = W4[s*H3 + d, o]  (relayout done once, outside kernel)
    w4t = jnp.transpose(w4.reshape(SEQ, H3, OUT), (1, 0, 2)).reshape(H3, SEQ * OUT)
    pieces += [pad_cols(w4t), pad_cols(b4)]

    packed = jnp.concatenate(pieces, axis=0)
    assert packed.shape == (OFF_B4 + 1, PACK_COLS)
    return jnp.pad(packed, ((0, PACK_ROWS - packed.shape[0]), (0, 0)))


def map_model_forward(cat_feat, packed_params):
    bs, seq, dim = cat_feat.shape
    assert seq == SEQ and dim == BANK_DIM
    assert packed_params.shape == (PACK_ROWS, PACK_COLS)

    # Free row-major flatten outside the kernel (row index = b*SEQ + s).
    x2d = cat_feat.reshape(bs * SEQ, BANK_DIM)

    # Batch tiling: one grid step per tile of samples; weights stay resident.
    if bs <= MAX_BATCH_TILE or bs % MAX_BATCH_TILE != 0:
        bt = bs
    else:
        bt = MAX_BATCH_TILE
    n_tiles = bs // bt

    flops = 2 * bs * SEQ * (BANK_DIM * H1 + H1 * H2 + H2 * H3 + H3 * OUT)
    bytes_accessed = 4 * (x2d.size + packed_params.size + bs * OUT)

    return pl.pallas_call(
        map_model_kernel,
        out_shape=jax.ShapeDtypeStruct((bs, OUT), jnp.float32),
        grid_spec=pltpu.PrefetchScalarGridSpec(
            num_scalar_prefetch=0,
            grid=(n_tiles,),
            in_specs=[
                pl.BlockSpec((bt * SEQ, BANK_DIM), lambda i: (i, 0)),
                pl.BlockSpec((PACK_ROWS, PACK_COLS), lambda i: (0, 0)),
            ],
            out_specs=pl.BlockSpec((bt, OUT), lambda i: (i, 0)),
        ),
        compiler_params=pltpu.CompilerParams(
            dimension_semantics=("parallel",)),
        cost_estimate=pl.CostEstimate(
            flops=flops, transcendentals=0, bytes_accessed=bytes_accessed),
    )(x2d, packed_params)


def init_params(key):
    """Deterministic synthetic parameters (shapes mirror the nn.Module)."""
    ks = jax.random.split(key, 8)

    def linear(kw, kb, fan_in, fan_out):
        bound = 1.0 / np.sqrt(fan_in)
        w = jax.random.uniform(kw, (fan_in, fan_out), jnp.float32, -bound, bound)
        b = jax.random.uniform(kb, (1, fan_out), jnp.float32, -bound, bound)
        return w, b

    w1, b1 = linear(ks[0], ks[1], BANK_DIM, H1)
    w2, b2 = linear(ks[2], ks[3], H1, H2)
    w3, b3 = linear(ks[4], ks[5], H2, H3)
    w4, b4 = linear(ks[6], ks[7], H3 * SEQ, OUT)
    return (w1, b1, w2, b2, w3, b3, w4, b4)


def reference_forward(cat_feat, params):
    """Plain-JAX reference replicating the PyTorch forward."""
    w1, b1, w2, b2, w3, b3, w4, b4 = params
    x = cat_feat @ w1 + b1
    x = x @ w2 + b2
    x = x @ w3 + b3
    x = x.reshape(cat_feat.shape[0], -1)
    return x @ w4 + b4


if __name__ == "__main__":
    key = jax.random.PRNGKey(0)
    k_x, k_p = jax.random.split(key)

    cat_feat = jax.random.normal(k_x, (BS, SEQ, BANK_DIM), dtype=jnp.float32)
    params = init_params(k_p)
    packed = pack_params(params)           # packed once, reused every call

    out = map_model_forward(cat_feat, packed)
    out = jax.block_until_ready(out)

    ref = reference_forward(cat_feat, params)
    np.testing.assert_allclose(np.asarray(out), np.asarray(ref),
                               rtol=1e-5, atol=1e-5)
    assert out.shape == (BS, OUT)
    print("KERNEL_OK")
</pallas_src>

<mosaic_0001>
module attributes {stable_mosaic.version = 11 : i64} {
  func.func @map_model_kernel(%arg0: i32, %arg1: memref<16x32xf32, #tpu.memory_space<vmem>>, %arg2: memref<808x128xf32, #tpu.memory_space<vmem>>, %arg3: memref<2x2xf32, #tpu.memory_space<vmem>>) attributes {dimension_semantics = [#tpu.dimension_semantics<parallel>], iteration_bounds = array<i64: 1>, scalar_prefetch = 0 : i64, scratch_operands = 0 : i64, tpu.core_type = #tpu.core_type<tc>, window_params = [{transform_indices = @transform_0, window_bounds = array<i64: 16, 32>}, {pipeline_mode = #tpu.pipeline_mode<synchronous>, transform_indices = @transform_1, window_bounds = array<i64: 808, 128>}, {transform_indices = @transform_2, window_bounds = array<i64: 2, 2>}]} {
    %c0 = arith.constant 0 : index
    %c0_0 = arith.constant 0 : index
    %0 = vector.load %arg1[%c0, %c0_0] : memref<16x32xf32, #tpu.memory_space<vmem>>, vector<16x32xf32>
    %cst = arith.constant 0.000000e+00 : f32
    %1 = vector.broadcast %cst : f32 to vector<16x128xf32>
    %c0_1 = arith.constant 0 : index
    %c0_2 = arith.constant 0 : index
    %2 = vector.load %arg2[%c0_1, %c0_2] : memref<808x128xf32, #tpu.memory_space<vmem>>, vector<32x128xf32>
    %c128 = arith.constant 128 : index
    %c0_3 = arith.constant 0 : index
    %3 = vector.load %arg2[%c128, %c0_3] : memref<808x128xf32, #tpu.memory_space<vmem>>, vector<1x128xf32>
    %c132 = arith.constant 132 : index
    %c0_4 = arith.constant 0 : index
    %4 = vector.load %arg2[%c132, %c0_4] : memref<808x128xf32, #tpu.memory_space<vmem>>, vector<128x128xf32>
    %cst_5 = arith.constant dense<0.000000e+00> : vector<16x128xf32>
    %5 = tpu.matmul %0, %2, %cst_5 {dimension_numbers = #tpu.dot_dimension_numbers<[1], [0], [0], [1], [0, 0, 1, 1], [], []>} : vector<16x32xf32>, vector<32x128xf32>, vector<16x128xf32> -> vector<16x128xf32>
    %6 = vector.broadcast %3 : vector<1x128xf32> to vector<16x128xf32>
    %7 = arith.addf %5, %6 : vector<16x128xf32>
    %cst_6 = arith.constant dense<0.000000e+00> : vector<16x128xf32>
    %8 = tpu.matmul %7, %4, %cst_6 {dimension_numbers = #tpu.dot_dimension_numbers<[1], [0], [0], [1], [0, 0, 1, 1], [], []>} : vector<16x128xf32>, vector<128x128xf32>, vector<16x128xf32> -> vector<16x128xf32>
    %9 = arith.addf %1, %8 : vector<16x128xf32>
    %c32 = arith.constant 32 : index
    %c0_7 = arith.constant 0 : index
    %10 = vector.load %arg2[%c32, %c0_7] : memref<808x128xf32, #tpu.memory_space<vmem>>, vector<32x128xf32>
    %c129 = arith.constant 129 : index
    %c0_8 = arith.constant 0 : index
    %11 = vector.load %arg2[%c129, %c0_8] : memref<808x128xf32, #tpu.memory_space<vmem>>, vector<1x128xf32>
    %c260 = arith.constant 260 : index
    %c0_9 = arith.constant 0 : index
    %12 = vector.load %arg2[%c260, %c0_9] : memref<808x128xf32, #tpu.memory_space<vmem>>, vector<128x128xf32>
    %cst_10 = arith.constant dense<0.000000e+00> : vector<16x128xf32>
    %13 = tpu.matmul %0, %10, %cst_10 {dimension_numbers = #tpu.dot_dimension_numbers<[1], [0], [0], [1], [0, 0, 1, 1], [], []>} : vector<16x32xf32>, vector<32x128xf32>, vector<16x128xf32> -> vector<16x128xf32>
    %14 = vector.broadcast %11 : vector<1x128xf32> to vector<16x128xf32>
    %15 = arith.addf %13, %14 : vector<16x128xf32>
    %cst_11 = arith.constant dense<0.000000e+00> : vector<16x128xf32>
    %16 = tpu.matmul %15, %12, %cst_11 {dimension_numbers = #tpu.dot_dimension_numbers<[1], [0], [0], [1], [0, 0, 1, 1], [], []>} : vector<16x128xf32>, vector<128x128xf32>, vector<16x128xf32> -> vector<16x128xf32>
    %17 = arith.addf %9, %16 : vector<16x128xf32>
    %c64 = arith.constant 64 : index
    %c0_12 = arith.constant 0 : index
    %18 = vector.load %arg2[%c64, %c0_12] : memref<808x128xf32, #tpu.memory_space<vmem>>, vector<32x128xf32>
    %c130 = arith.constant 130 : index
    %c0_13 = arith.constant 0 : index
    %19 = vector.load %arg2[%c130, %c0_13] : memref<808x128xf32, #tpu.memory_space<vmem>>, vector<1x128xf32>
    %c388 = arith.constant 388 : index
    %c0_14 = arith.constant 0 : index
    %20 = vector.load %arg2[%c388, %c0_14] : memref<808x128xf32, #tpu.memory_space<vmem>>, vector<128x128xf32>
    %cst_15 = arith.constant dense<0.000000e+00> : vector<16x128xf32>
    %21 = tpu.matmul %0, %18, %cst_15 {dimension_numbers = #tpu.dot_dimension_numbers<[1], [0], [0], [1], [0, 0, 1, 1], [], []>} : vector<16x32xf32>, vector<32x128xf32>, vector<16x128xf32> -> vector<16x128xf32>
    %22 = vector.broadcast %19 : vector<1x128xf32> to vector<16x128xf32>
    %23 = arith.addf %21, %22 : vector<16x128xf32>
    %cst_16 = arith.constant dense<0.000000e+00> : vector<16x128xf32>
    %24 = tpu.matmul %23, %20, %cst_16 {dimension_numbers = #tpu.dot_dimension_numbers<[1], [0], [0], [1], [0, 0, 1, 1], [], []>} : vector<16x128xf32>, vector<128x128xf32>, vector<16x128xf32> -> vector<16x128xf32>
    %25 = arith.addf %17, %24 : vector<16x128xf32>
    %c96 = arith.constant 96 : index
    %c0_17 = arith.constant 0 : index
    %26 = vector.load %arg2[%c96, %c0_17] : memref<808x128xf32, #tpu.memory_space<vmem>>, vector<32x128xf32>
    %c131 = arith.constant 131 : index
    %c0_18 = arith.constant 0 : index
    %27 = vector.load %arg2[%c131, %c0_18] : memref<808x128xf32, #tpu.memory_space<vmem>>, vector<1x128xf32>
    %c516 = arith.constant 516 : index
    %c0_19 = arith.constant 0 : index
    %28 = vector.load %arg2[%c516, %c0_19] : memref<808x128xf32, #tpu.memory_space<vmem>>, vector<128x128xf32>
    %cst_20 = arith.constant dense<0.000000e+00> : vector<16x128xf32>
    %29 = tpu.matmul %0, %26, %cst_20 {dimension_numbers = #tpu.dot_dimension_numbers<[1], [0], [0], [1], [0, 0, 1, 1], [], []>} : vector<16x32xf32>, vector<32x128xf32>, vector<16x128xf32> -> vector<16x128xf32>
    %30 = vector.broadcast %27 : vector<1x128xf32> to vector<16x128xf32>
    %31 = arith.addf %29, %30 : vector<16x128xf32>
    %cst_21 = arith.constant dense<0.000000e+00> : vector<16x128xf32>
    %32 = tpu.matmul %31, %28, %cst_21 {dimension_numbers = #tpu.dot_dimension_numbers<[1], [0], [0], [1], [0, 0, 1, 1], [], []>} : vector<16x128xf32>, vector<128x128xf32>, vector<16x128xf32> -> vector<16x128xf32>
    %33 = arith.addf %25, %32 : vector<16x128xf32>
    %c644 = arith.constant 644 : index
    %c0_22 = arith.constant 0 : index
    %34 = vector.load %arg2[%c644, %c0_22] : memref<808x128xf32, #tpu.memory_space<vmem>>, vector<1x128xf32>
    %35 = vector.broadcast %34 : vector<1x128xf32> to vector<16x128xf32>
    %36 = arith.addf %33, %35 : vector<16x128xf32>
    %c645 = arith.constant 645 : index
    %c0_23 = arith.constant 0 : index
    %37 = vector.load %arg2[%c645, %c0_23] : memref<808x128xf32, #tpu.memory_space<vmem>>, vector<128x32xf32>
    %c773 = arith.constant 773 : index
    %c0_24 = arith.constant 0 : index
    %38 = vector.load %arg2[%c773, %c0_24] : memref<808x128xf32, #tpu.memory_space<vmem>>, vector<1x32xf32>
    %cst_25 = arith.constant dense<0.000000e+00> : vector<16x32xf32>
    %39 = tpu.matmul %36, %37, %cst_25 {dimension_numbers = #tpu.dot_dimension_numbers<[1], [0], [0], [1], [0, 0, 1, 1], [], []>} : vector<16x128xf32>, vector<128x32xf32>, vector<16x32xf32> -> vector<16x32xf32>
    %40 = vector.broadcast %38 : vector<1x32xf32> to vector<16x32xf32>
    %41 = arith.addf %39, %40 : vector<16x32xf32>
    %c774 = arith.constant 774 : index
    %c0_26 = arith.constant 0 : index
    %42 = vector.load %arg2[%c774, %c0_26] : memref<808x128xf32, #tpu.memory_space<vmem>>, vector<32x16xf32>
    %c806 = arith.constant 806 : index
    %c0_27 = arith.constant 0 : index
    %43 = vector.load %arg2[%c806, %c0_27] : memref<808x128xf32, #tpu.memory_space<vmem>>, vector<1x2xf32>
    %cst_28 = arith.constant dense<0.000000e+00> : vector<16x16xf32>
    %44 = tpu.matmul %41, %42, %cst_28 {dimension_numbers = #tpu.dot_dimension_numbers<[1], [0], [0], [1], [0, 0, 1, 1], [], []>} : vector<16x32xf32>, vector<32x16xf32>, vector<16x16xf32> -> vector<16x16xf32>
    %45 = tpu.iota {dimensions = array<i32: 0>} : vector<16x16xi32>
    %46 = tpu.iota {dimensions = array<i32: 1>} : vector<16x16xi32>
    %c7_i32 = arith.constant 7 : i32
    %47 = vector.broadcast %c7_i32 : i32 to vector<16x16xi32>
    %48 = arith.andi %45, %47 : vector<16x16xi32>
    %c1_i32 = arith.constant 1 : i32
    %49 = vector.broadcast %c1_i32 : i32 to vector<16x16xi32>
    %50 = arith.shrsi %46, %49 : vector<16x16xi32>
    %51 = arith.cmpi eq, %48, %50 : vector<16x16xi32>
    %cst_29 = arith.constant 1.000000e+00 : f32
    %cst_30 = arith.constant 0.000000e+00 : f32
    %52 = vector.broadcast %cst_29 : f32 to vector<16x16xf32>
    %53 = vector.broadcast %cst_30 : f32 to vector<16x16xf32>
    %54 = arith.select %51, %52, %53 : vector<16x16xi1>, vector<16x16xf32>
    %55 = arith.mulf %44, %54 : vector<16x16xf32>
    %56 = tpu.iota {dimensions = array<i32: 0>} : vector<16x2xi32>
    %57 = tpu.iota {dimensions = array<i32: 1>} : vector<16x2xi32>
    %c1_i32_31 = arith.constant 1 : i32
    %58 = vector.broadcast %c1_i32_31 : i32 to vector<16x2xi32>
    %59 = arith.andi %56, %58 : vector<16x2xi32>
    %60 = arith.cmpi eq, %59, %57 : vector<16x2xi32>
    %cst_32 = arith.constant 1.000000e+00 : f32
    %cst_33 = arith.constant 0.000000e+00 : f32
    %61 = vector.broadcast %cst_32 : f32 to vector<16x2xf32>
    %62 = vector.broadcast %cst_33 : f32 to vector<16x2xf32>
    %63 = arith.select %60, %61, %62 : vector<16x2xi1>, vector<16x2xf32>
    %cst_34 = arith.constant dense<0.000000e+00> : vector<16x2xf32>
    %64 = tpu.matmul %55, %63, %cst_34 {dimension_numbers = #tpu.dot_dimension_numbers<[1], [0], [0], [1], [0, 0, 1, 1], [], []>} : vector<16x16xf32>, vector<16x2xf32>, vector<16x2xf32> -> vector<16x2xf32>
    %65 = tpu.iota {dimensions = array<i32: 0>} : vector<2x16xi32>
    %66 = tpu.iota {dimensions = array<i32: 1>} : vector<2x16xi32>
    %c3_i32 = arith.constant 3 : i32
    %67 = vector.broadcast %c3_i32 : i32 to vector<2x16xi32>
    %68 = arith.shrsi %66, %67 : vector<2x16xi32>
    %69 = arith.cmpi eq, %68, %65 : vector<2x16xi32>
    %cst_35 = arith.constant 1.000000e+00 : f32
    %cst_36 = arith.constant 0.000000e+00 : f32
    %70 = vector.broadcast %cst_35 : f32 to vector<2x16xf32>
    %71 = vector.broadcast %cst_36 : f32 to vector<2x16xf32>
    %72 = arith.select %69, %70, %71 : vector<2x16xi1>, vector<2x16xf32>
    %cst_37 = arith.constant dense<0.000000e+00> : vector<2x2xf32>
    %73 = tpu.matmul %72, %64, %cst_37 {dimension_numbers = #tpu.dot_dimension_numbers<[1], [0], [0], [1], [0, 0, 1, 1], [], []>} : vector<2x16xf32>, vector<16x2xf32>, vector<2x2xf32> -> vector<2x2xf32>
    %74 = vector.broadcast %43 : vector<1x2xf32> to vector<2x2xf32>
    %75 = arith.addf %73, %74 : vector<2x2xf32>
    %c0_38 = arith.constant 0 : index
    %c0_39 = arith.constant 0 : index
    %76 = vector.load %arg3[%c0_38, %c0_39] : memref<2x2xf32, #tpu.memory_space<vmem>>, vector<2x2xf32>
    tpu.vector_store %arg3[%c0_38, %c0_39], %75 {strides = array<i32>} : memref<2x2xf32, #tpu.memory_space<vmem>>, vector<2x2xf32>,
    return
  }
  func.func @transform_0(%arg0: i32) -> (i32, i32) {
    %c0_i32 = arith.constant 0 : i32
    %c0_i32_0 = arith.constant 0 : i32
    return %arg0, %c0_i32 : i32, i32
  }
  func.func @transform_1(%arg0: i32) -> (i32, i32) {
    %c0_i32 = arith.constant 0 : i32
    %c0_i32_0 = arith.constant 0 : i32
    %c0_i32_1 = arith.constant 0 : i32
    return %c0_i32, %c0_i32_0 : i32, i32
  }
  func.func @transform_2(%arg0: i32) -> (i32, i32) {
    %c0_i32 = arith.constant 0 : i32
    %c0_i32_0 = arith.constant 0 : i32
    return %arg0, %c0_i32 : i32, i32
  }
}

</mosaic_0001>

<bundles_post_ra>
// kernel: tpu_custom_call.1
= control target key start
LH: loop header
LB: loop body
LE: loop exit
PB: predicated region body
PF: predicated region fallthrough
CT: control target
= control target key end

     0   :  { %7 = vsyncpa [#allocation3], 0  ;;  %s1918_s0 = inlined_call_operand.hbm [shape: f32[16,32], index: 0, kind: input, shape index: {}]   ;;  %s1919_s1 = inlined_call_operand.hbm [shape: f32[808,128], index: 1, kind: input, shape index: {}]   ;;  %s1920_s2 = inlined_call_operand.hbm [shape: f32[2,2], index: 2, kind: output, shape index: {}]  }
   0x1   :  { %8 = vsyncpa [#allocation6], 0 }
   0x2   :  { %9 = vsyncpa [#allocation4], 0  ;;  %s1829_s9 = smov [#allocation2]   ;;  %s1757_s13 = scalar_lea.hbm %s1918_s0, 256 }
   0x3   :  { %s15_s10 = sshll.u32 %s1829_s9, 4  ;;  %p1758_p0 = scmp.ne.s32.totalorder %s1918_s0, %s1757_s13  ;;  %s16_s10 = int_to_ptr.vmem [resolvable:$true] %s15_s10 }
   0x4   :  { %p1761_p1 = scmp.lt.u32.totalorder %s1757_s13, %s1918_s0 }
   0x6   :  { %p1763_p2 = pnand %p1761_p1, %p1758_p0 }
   0x8   :  { %1766 = shalt.err (!%p1763_p2)
}
   0x9   :  { %s1767_s18 = scalar_lea.vmem %s16_s10, 256  ;;  %p1772_p4 = scmp.lt.s32.totalorder %s16_s10, %s16_s10 }
   0xa   :  { %p1768_p3 = scmp.ne.s32.totalorder %s16_s10, %s1767_s18  ;;  %p1773_p5 = scmp.lt.s32.totalorder %s1767_s18, %s1767_s18 }
   0xc   :  { %p1774_p6 = por %p1773_p5, %p1772_p4 }
   0xe   :  { %p1775_p7 = pnand %p1774_p6, %p1768_p3 }
  0x10   :  { %1778 = shalt.err (!%p1775_p7)
}
  0x11   :  { %s1830_s19 = smov 128   ;;  %s1831_s20 = smov 8  }
  0x12   :  { %21 = dma.hbm_to_vmem [thread:$0]  %s1918_s0, 256, %s16_s10, [#allocation3], %s1830_s19, %s1830_s19, %s1831_s20  }
  0x13   :  { %s1832_s23 = smov [#allocation5]   ;;  %s1779_s27 = scalar_lea.hbm %s1919_s1, 12928 }
  0x14   :  { %s27_s24 = sshll.u32 %s1832_s23, 4  ;;  %p1780_p8 = scmp.ne.s32.totalorder %s1919_s1, %s1779_s27  ;;  %s28_s24 = int_to_ptr.vmem [resolvable:$true] %s27_s24 }
  0x15   :  { %p1783_p9 = scmp.lt.u32.totalorder %s1779_s27, %s1919_s1 }
  0x17   :  { %p1785_p10 = pnand %p1783_p9, %p1780_p8 }
  0x19   :  { %1788 = shalt.err (!%p1785_p10)
}
  0x1a   :  { %s1789_s4 = scalar_lea.vmem %s28_s24, 12928  ;;  %p1794_p12 = scmp.lt.s32.totalorder %s28_s24, %s28_s24 }
  0x1b   :  { %p1790_p11 = scmp.ne.s32.totalorder %s28_s24, %s1789_s4  ;;  %p1795_p13 = scmp.lt.s32.totalorder %s1789_s4, %s1789_s4 }
  0x1d   :  { %p1796_p0 = por %p1795_p13, %p1794_p12 }
  0x1f   :  { %p1797_p1 = pnand %p1796_p0, %p1790_p11 }
  0x21   :  { %1800 = shalt.err (!%p1797_p1)
}
  0x22   :  { %33 = dma.hbm_to_vmem [thread:$0]  %s1919_s1, 12928, %s28_s24, [#allocation6], %s1830_s19, %s1830_s19, %s1831_s20  }
  0x23   :  { %1823 = dma.done.wait [#allocation3], 256  }
  0x24   :  { %1824 = vsyncadd [#allocation3], 4294967040 }
  0x25   :  { %1825 = dma.done.wait [#allocation6], 12928  }
  0x26   :  { %1826 = vsyncadd [#allocation6], 4294954368  ;;  %vm67_vm0 = vcmask 261120   ;;  %v149_v0 = vld [vmem:[#allocation5 + $0x20] sm:$0xff]  ;;  %v150_v1 = vld [vmem:[#allocation5 + $0x28] sm:$0xff]  ;;  %vm962_vm6 = vcmask 130048  }
  0x27   :  { %v151_v2 = vld [vmem:[#allocation5 + $0x30] sm:$0xff]  ;;  %v1543_v3 = vpack.c.bf16 %v150_v1, %v149_v0  ;;  %v152_v4 = vld [vmem:[#allocation5 + $0x38] sm:$0xff]  ;;  %v42_v7 = vld [vmem:[#allocation5] sm:$0xff]  ;;  %vm1836_vm7 = vmmov 0   ;;  %s1837_s1 = smov [#allocation7]   ;;  %vm1124_vm9 = vcmask 9216  }
  0x28   :  { %v1877_v5 = vld [vmem:[#allocation2] sm:$0xff]  ;;  %v1547_v6 = vpack.c.bf16 %v152_v4, %v151_v2  ;;  %v43_v8 = vld [vmem:[#allocation5 + $0x8] sm:$0xff]  ;;  %v45_v13 = vld [vmem:[#allocation5 + $0x18] sm:$0xff]  ;;  %s1132_s6 = sshll.u32 %s1837_s1, 4  ;;  %s1133_s6 = int_to_ptr.vmem [resolvable:$true] %s1132_s6 }
  0x29   :  { %1310 = vmatprep.mubr.msk.f32.mxu1 %vm67_vm0, %v1877_v5  ;;  %v154_v9 = vld [vmem:[#allocation5 + $0x104] sm:$0xff]  ;;  %1299 = vmatprep.mubr.msk.f32.mxu0 %vm67_vm0, %v1877_v5  ;;  %v1535_v10 = vpack.c.bf16 %v43_v8, %v42_v7  ;;  %v155_v11 = vld [vmem:[#allocation5 + $0x10c] sm:$0xff]  ;;  %v156_v16 = vld [vmem:[#allocation5 + $0x114] sm:$0xff]  ;;  %s1801_s7 = scalar_lea.vmem %s1133_s6, 32  ;;  %p1806_p3 = scmp.lt.s32.totalorder %s1133_s6, %s1133_s6 }
  0x2a   :  { %1544 = vmatprep.subr.bf16.mxu1 %v1543_v3  ;;  %v44_v12 = vld [vmem:[#allocation5 + $0x10] sm:$0xff]  ;;  %v1551_v15 = vpack.c.bf16 %v155_v11, %v154_v9  ;;  %v157_v17 = vld [vmem:[#allocation5 + $0x11c] sm:$0xff]  ;;  %v158_v20 = vld [vmem:[#allocation5 + $0x124] sm:$0xff]  ;;  %p1802_p2 = scmp.ne.s32.totalorder %s1133_s6, %s1801_s7  ;;  %p1807_p4 = scmp.lt.s32.totalorder %s1801_s7, %s1801_s7 }
  0x2b   :  { %1546 = vmatpush3.bf16.msra.mxu1 %v1543_v3  ;;  %v1539_v14 = vpack.c.bf16 %v45_v13, %v44_v12  ;;  %1536 = vmatprep.subr.bf16.mxu0 %v1535_v10  ;;  %v1883_v18 = vld [vmem:[#allocation2 + $0x8] sm:$0xff]  ;;  %v1555_v19 = vpack.c.bf16 %v157_v17, %v156_v16  ;;  %v159_v21 = vld [vmem:[#allocation5 + $0x12c] sm:$0xff]  ;;  %v162_v26 = vld [vmem:[#allocation5 + $0x144] sm:$0xff] }
  0x2c   :  { %1548 = vmatprep.subr.bf16.mxu1 %v1547_v6  ;;  %1538 = vmatpush3.bf16.msra.mxu0 %v1535_v10  ;;  %v1559_v22 = vpack.c.bf16 %v159_v21, %v158_v20  ;;  %v160_v23 = vld [vmem:[#allocation5 + $0x134] sm:$0xff]  ;;  %v161_v24 = vld [vmem:[#allocation5 + $0x13c] sm:$0xff]  ;;  %v163_v27 = vld [vmem:[#allocation5 + $0x14c] sm:$0xff]  ;;  %p1808_p5 = por %p1807_p4, %p1806_p3 }
  0x2d   :  { %1540 = vmatprep.subr.bf16.mxu0 %v1539_v14  ;;  %v1563_v25 = vpack.c.bf16 %v161_v24, %v160_v23  ;;  %v1567_v28 = vpack.c.bf16 %v163_v27, %v162_v26  ;;  %v164_v29 = vld [vmem:[#allocation5 + $0x154] sm:$0xff]  ;;  %v165_v30 = vld [vmem:[#allocation5 + $0x15c] sm:$0xff]  ;;  %v166_v32 = vld [vmem:[#allocation5 + $0x164] sm:$0xff] }
  0x2e   :  { %v1571_v31 = vpack.c.bf16 %v165_v30, %v164_v29  ;;  %v167_v33 = vld [vmem:[#allocation5 + $0x16c] sm:$0xff]  ;;  %v168_v35 = vld [vmem:[#allocation5 + $0x174] sm:$0xff]  ;;  %v169_v36 = vld [vmem:[#allocation5 + $0x17c] sm:$0xff]  ;;  %p1809_p6 = pnand %p1808_p5, %p1802_p2 }
  0x2f   :  { %1550 = vmatpush3.bf16.msra.mxu1 %v1547_v6  ;;  %v1575_v34 = vpack.c.bf16 %v167_v33, %v166_v32  ;;  %v1579_v37 = vpack.c.bf16 %v169_v36, %v168_v35  ;;  %v399_v38 = vld [vmem:[#allocation5 + $0x40] sm:$0xff]  ;;  %v400_v39 = vld [vmem:[#allocation5 + $0x48] sm:$0xff]  ;;  %v49_v43 = vld [vmem:[#allocation5 + $0x94] sm:$0xff] }
  0x30   :  { %1552 = vmatprep.subr.bf16.mxu1 %v1551_v15  ;;  %1542 = vmatpush3.bf16.msra.mxu0 %v1539_v14  ;;  %v1889_v40 = vpack.c.bf16 %v400_v39, %v399_v38  ;;  %v47_v41 = vld [vmem:[#allocation5 + $0x84] sm:$0xff]  ;;  %v48_v42 = vld [vmem:[#allocation5 + $0x8c] sm:$0xff]  ;;  %v50_v45 = vld [vmem:[#allocation5 + $0x9c] sm:$0xff] }
  0x31   :  { %v1583_v44 = vpack.c.bf16 %v48_v42, %v47_v41  ;;  %v1587_v46 = vpack.c.bf16 %v50_v45, %v49_v43  ;;  %v51_v47 = vld [vmem:[#allocation5 + $0xa4] sm:$0xff]  ;;  %v52_v48 = vld [vmem:[#allocation5 + $0xac] sm:$0xff]  ;;  %v53_v50 = vld [vmem:[#allocation5 + $0xb4] sm:$0xff] }
  0x32   :  { %1311 = vmatmul.mubr.msk.f32.vlgmr.msra.gmra.mrb[0].mxu1 %vm67_vm0, %v1883_v18  ;;  %v1591_v49 = vpack.c.bf16 %v52_v48, %v51_v47  ;;  %v54_v51 = vld [vmem:[#allocation5 + $0xbc] sm:$0xff]  ;;  %v55_v53 = vld [vmem:[#allocation5 + $0xc4] sm:$0xff]  ;;  %v56_v54 = vld [vmem:[#allocation5 + $0xcc] sm:$0xff] }
  0x33   :  { %1554 = vmatpush3.bf16.msra.mxu1 %v1551_v15  ;;  %1300 = vmatmul.mubr.msk.f32.vlgmr.msra.gmra.mrb[0].mxu0 %vm67_vm0, %v1883_v18  ;;  %v1595_v52 = vpack.c.bf16 %v54_v51, %v53_v50  ;;  %v1599_v55 = vpack.c.bf16 %v56_v54, %v55_v53  ;;  %v57_v56 = vld [vmem:[#allocation5 + $0xd4] sm:$0xff]  ;;  %v58_v57 = vld [vmem:[#allocation5 + $0xdc] sm:$0xff]  ;;  %v59_v59 = vld [vmem:[#allocation5 + $0xe4] sm:$0xff] }
  0x34   :  { %1556 = vmatprep.subr.bf16.mxu1 %v1555_v19  ;;  %1584 = vmatprep.subr.bf16.mxu0 %v1583_v44  ;;  %v1603_v58 = vpack.c.bf16 %v58_v57, %v57_v56  ;;  %v60_v60 = vld [vmem:[#allocation5 + $0xec] sm:$0xff]  ;;  %v61_v62 = vld [vmem:[#allocation5 + $0xf4] sm:$0xff]  ;;  %v62_v63 = vld [vmem:[#allocation5 + $0xfc] sm:$0xff] }
  0x35   :  { %1586 = vmatpush3.bf16.msra.mxu0 %v1583_v44  ;;  %v1607_v61 = vpack.c.bf16 %v60_v60, %v59_v59  ;;  %v1611_v0 = vpack.c.bf16 %v62_v63, %v61_v62  ;;  %v404_v1 = vld [vmem:[#allocation5 + $0x184] sm:$0xff]  ;;  %v405_v2 = vld [vmem:[#allocation5 + $0x18c] sm:$0xff]  ;;  %v1145_v4 = vld [vmem:[#allocation5 + $0x81] ss:$0 sm:$0xff] }
  0x36   :  { %1588 = vmatprep.subr.bf16.mxu0 %v1587_v46  ;;  %v1623_v3 = vpack.c.bf16 %v405_v2, %v404_v1  ;;  %v401_v7 = vld [vmem:[#allocation5 + $0x50] sm:$0xff]  ;;  %v402_v8 = vld [vmem:[#allocation5 + $0x58] sm:$0xff]  ;;  %v1142_v10 = vld [vmem:[#allocation5 + $0x80] ss:$0 sm:$0xff] }
  0x37   :  { %1558 = vmatpush3.bf16.msra.mxu1 %v1555_v19  ;;  %v1619_v14 = vpack.c.bf16 %v402_v8, %v401_v7  ;;  %v406_v16 = vld [vmem:[#allocation5 + $0x194] sm:$0xff]  ;;  %v407_v17 = vld [vmem:[#allocation5 + $0x19c] sm:$0xff]  ;;  %v577_v20 = vld [vmem:[#allocation5 + $0x68] sm:$0xff] }
  0x38   :  { %1560 = vmatprep.subr.bf16.mxu1 %v1559_v22  ;;  %v576_v19 = vld [vmem:[#allocation5 + $0x60] sm:$0xff]  ;;  %v1627_v23 = vpack.c.bf16 %v407_v17, %v406_v16  ;;  %v579_v26 = vld [vmem:[#allocation5 + $0x78] sm:$0xff]  ;;  %v413_v35 = vld [vmem:[#allocation5 + $0x1cc] sm:$0xff] }
  0x39   :  { %1590 = vmatpush3.bf16.msra.mxu0 %v1587_v46  ;;  %v1655_v24 = vpack.c.bf16 %v577_v20, %v576_v19  ;;  %v408_v27 = vld [vmem:[#allocation5 + $0x1a4] sm:$0xff]  ;;  %v411_v32 = vld [vmem:[#allocation5 + $0x1bc] sm:$0xff]  ;;  %v418_v42 = vld [vmem:[#allocation5 + $0x1f4] sm:$0xff] }
  0x3a   :  { %1592 = vmatprep.subr.bf16.mxu0 %v1591_v49  ;;  %v415_v38 = vld [vmem:[#allocation5 + $0x1dc] sm:$0xff]  ;;  %v581_v45 = vld [vmem:[#allocation5 + $0x204] sm:$0xff]  ;;  %v582_v46 = vld [vmem:[#allocation5 + $0x20c] sm:$0xff] }
  0x3b   :  { %1562 = vmatpush3.bf16.msra.mxu1 %v1559_v22  ;;  %v419_v43 = vld [vmem:[#allocation5 + $0x1fc] sm:$0xff]  ;;  %v1663_v47 = vpack.c.bf16 %v582_v46, %v581_v45  ;;  %v761_v48 = vld [vmem:[#allocation5 + $0x28d] sm:$0xff]  ;;  %v764_v53 = vld [vmem:[#allocation5 + $0x2a5] sm:$0xff] }
  0x3c   :  { %1564 = vmatprep.subr.bf16.mxu1 %v1563_v25  ;;  %v1651_v44 = vpack.c.bf16 %v419_v43, %v418_v42  ;;  %v763_v51 = vld [vmem:[#allocation5 + $0x29d] sm:$0xff]  ;;  %v765_v54 = vld [vmem:[#allocation5 + $0x2ad] sm:$0xff]  ;;  %v766_v56 = vld [vmem:[#allocation5 + $0x2b5] sm:$0xff] }
  0x3d   :  { %1594 = vmatpush3.bf16.msra.mxu0 %v1591_v49  ;;  %v762_v49 = vld [vmem:[#allocation5 + $0x295] sm:$0xff]  ;;  %v767_v57 = vld [vmem:[#allocation5 + $0x2bd] sm:$0xff]  ;;  %v768_v59 = vld [vmem:[#allocation5 + $0x2c5] sm:$0xff] }
  0x3e   :  { %1596 = vmatprep.subr.bf16.mxu0 %v1595_v52  ;;  %v769_v60 = vld [vmem:[#allocation5 + $0x2cd] sm:$0xff]  ;;  %v770_v62 = vld [vmem:[#allocation5 + $0x2d5] sm:$0xff]  ;;  %v771_v63 = vld [vmem:[#allocation5 + $0x2dd] sm:$0xff] }
  0x3f   :  { %1566 = vmatpush3.bf16.msra.mxu1 %v1563_v25  ;;  %v578_v25 = vld [vmem:[#allocation5 + $0x70] sm:$0xff]  ;;  %v772_v1 = vld [vmem:[#allocation5 + $0x2e5] sm:$0xff]  ;;  %v1148_v7 = vld [vmem:[#allocation5 + $0x82] ss:$0 sm:$0xff] }
  0x40   :  { %1568 = vmatprep.subr.bf16.mxu1 %v1567_v28  ;;  %v1659_v29 = vpack.c.bf16 %v579_v26, %v578_v25  ;;  %v773_v2 = vld [vmem:[#allocation5 + $0x2ed] sm:$0xff]  ;;  %v1151_v19 = vld [vmem:[#allocation5 + $0x83] ss:$0 sm:$0xff]  ;;  %v589_v26 = vld [vmem:[#allocation5 + $0x244] sm:$0xff] }
  0x41   :  { %1598 = vmatpush3.bf16.msra.mxu0 %v1595_v52  ;;  %v1699_v52 = vpack.c.bf16 %v763_v51, %v762_v49  ;;  %v586_v16 = vld [vmem:[#allocation5 + $0x22c] sm:$0xff]  ;;  %v587_v20 = vld [vmem:[#allocation5 + $0x234] sm:$0xff]  ;;  %v1154_v46 = vld [vmem:[#allocation5 + $0x284] ss:$0 sm:$0xff] }
  0x42   :  { %1600 = vmatprep.subr.bf16.mxu0 %v1599_v55  ;;  %v857_v42 = vld [vmem:[#allocation5 + $0x30e] sm:$0xff]  ;;  %v859_v51 = vld [vmem:[#allocation5 + $0x31e] sm:$0xff] }
  0x43   :  { %1570 = vmatpush3.bf16.msra.mxu1 %v1567_v28  ;;  %v409_v28 = vld [vmem:[#allocation5 + $0x1ac] sm:$0xff] }
  0x44   :  { %1572 = vmatprep.subr.bf16.mxu1 %v1571_v31  ;;  %v1631_v30 = vpack.c.bf16 %v409_v28, %v408_v27  ;;  %v590_v27 = vld [vmem:[#allocation5 + $0x24c] sm:$0xff] }
  0x45   :  { %1602 = vmatpush3.bf16.msra.mxu0 %v1599_v55  ;;  %v1703_v55 = vpack.c.bf16 %v765_v54, %v764_v53  ;;  %v1679_v28 = vpack.c.bf16 %v590_v27, %v589_v26  ;;  %v1155_v53 = vld [vmem:[#allocation5 + $0x305] ss:$0 sm:$0xff] }
  0x46   :  { %1604 = vmatprep.subr.bf16.mxu0 %v1603_v58 }
  0x47   :  { %1574 = vmatpush3.bf16.msra.mxu1 %v1571_v31  ;;  %v410_v31 = vld [vmem:[#allocation5 + $0x1b4] sm:$0xff] }
  0x48   :  { %1576 = vmatprep.subr.bf16.mxu1 %v1575_v34  ;;  %v1635_v33 = vpack.c.bf16 %v411_v32, %v410_v31  ;;  %v593_v32 = vld [vmem:[#allocation5 + $0x264] sm:$0xff] }
  0x49   :  { %1606 = vmatpush3.bf16.msra.mxu0 %v1603_v58  ;;  %v1707_v58 = vpack.c.bf16 %v767_v57, %v766_v56 }
  0x4a   :  { %1608 = vmatprep.subr.bf16.mxu0 %v1607_v61 }
  0x4b   :  { %1578 = vmatpush3.bf16.msra.mxu1 %v1575_v34  ;;  %v412_v34 = vld [vmem:[#allocation5 + $0x1c4] sm:$0xff] }
  0x4c   :  { %1580 = vmatprep.subr.bf16.mxu1 %v1579_v37  ;;  %v1639_v36 = vpack.c.bf16 %v413_v35, %v412_v34  ;;  %v595_v35 = vld [vmem:[#allocation5 + $0x274] sm:$0xff] }
  0x4d   :  { %1610 = vmatpush3.bf16.msra.mxu0 %v1607_v61  ;;  %v1711_v61 = vpack.c.bf16 %v769_v60, %v768_v59 }
  0x4e   :  { %1612 = vmatprep.subr.bf16.mxu0 %v1611_v0 }
  0x4f   :  { %1582 = vmatpush3.bf16.msra.mxu1 %v1579_v37  ;;  %v414_v37 = vld [vmem:[#allocation5 + $0x1d4] sm:$0xff] }
  0x50   :  { %1616 = vmatprep.subr.bf16.mxu1 %v1889_v40  ;;  %v1643_v39 = vpack.c.bf16 %v415_v38, %v414_v37 }
  0x51   :  { %1614 = vmatpush3.bf16.msra.mxu0 %v1611_v0  ;;  %v1715_v0 = vpack.c.bf16 %v771_v63, %v770_v62 }
  0x52   :  { %1624 = vmatprep.subr.bf16.mxu0 %v1623_v3 }
 0x105   :  { %v1312_v6 = vpop.f32.mrb[0].mxu1 }
 0x106   :  { %v240_v9 = vpop.f32.mrb[1].mxu1  ;;  %v1301_v12 = vpop.f32.mrb[0].mxu0  ;;  %v246_v13 = vadd.f32 %v1312_v6, %v1145_v4 }
 0x107   :  { %v241_v11 = vadd.f32 %v1145_v4, %v240_v9  ;;  %v140_v15 = vpop.f32.mrb[1].mxu0  ;;  %v146_v21 = vadd.f32 %v1301_v12, %v1142_v10  ;;  %v583_v9 = vld [vmem:[#allocation5 + $0x214] sm:$0xff] }
 0x108   :  { %v141_v22 = vadd.f32 %v1142_v10, %v140_v15  ;;  %v584_v10 = vld [vmem:[#allocation5 + $0x21c] sm:$0xff]  ;;  %v585_v15 = vld [vmem:[#allocation5 + $0x224] sm:$0xff] }
 0x109   :  { %1345 = vmatprep.mubr.f32.mxu1 %v241_v11  ;;  %v1671_v17 = vpack.c.bf16 %v586_v16, %v585_v15 }
 0x10a   :  { %1346 = vmatmul.mubr.f32.vlgmr.msra.gmra.mrb[2].mxu1 %v246_v13  ;;  %1380 = vmatprep.mubr.f32.mxu0 %v141_v22 }
 0x10b   :  { %1618 = vmatpush3.bf16.msra.mxu1 %v1889_v40  ;;  %1391 = vmatprep.mubr.msk.f32.mxu1 %vm67_vm0, %v1877_v5  ;;  %v417_v40 = vld [vmem:[#allocation5 + $0x1ec] sm:$0xff] }
 0x10c   :  { %1620 = vmatprep.subr.bf16.mxu1 %v1619_v14  ;;  %1381 = vmatmul.mubr.f32.vlgmr.msra.gmra.mrb[2].mxu0 %v146_v21  ;;  %v588_v21 = vld [vmem:[#allocation5 + $0x23c] sm:$0xff] }
 0x10d   :  { %1626 = vmatpush3.bf16.msra.mxu0 %v1623_v3  ;;  %v1719_v3 = vpack.c.bf16 %v773_v2, %v772_v1  ;;  %v1675_v25 = vpack.c.bf16 %v588_v21, %v587_v20 }
 0x10e   :  { %1628 = vmatprep.subr.bf16.mxu0 %v1627_v23 }
 0x10f   :  { %1622 = vmatpush3.bf16.msra.mxu1 %v1619_v14  ;;  %v1667_v14 = vpack.c.bf16 %v584_v10, %v583_v9 }
 0x110   :  { %1656 = vmatprep.subr.bf16.mxu1 %v1655_v24 }
 0x111   :  { %1630 = vmatpush3.bf16.msra.mxu0 %v1627_v23 }
 0x112   :  { %1392 = vmatmul.mubr.msk.f32.vlgmr.msra.gmra.mrb[4].mxu1 %vm67_vm0, %v1883_v18  ;;  %1632 = vmatprep.subr.bf16.mxu0 %v1631_v30 }
 0x113   :  { %1658 = vmatpush3.bf16.msra.mxu1 %v1655_v24  ;;  %1437 = vmatprep.mubr.msk.f32.mxu1 %vm67_vm0, %v1877_v5  ;;  %v416_v5 = vld [vmem:[#allocation5 + $0x1e4] sm:$0xff] }
 0x114   :  { %1660 = vmatprep.subr.bf16.mxu1 %v1659_v29  ;;  %v1647_v41 = vpack.c.bf16 %v417_v40, %v416_v5  ;;  %v775_v5 = vld [vmem:[#allocation5 + $0x2fd] sm:$0xff] }
 0x115   :  { %1634 = vmatpush3.bf16.msra.mxu0 %v1631_v30  ;;  %v592_v30 = vld [vmem:[#allocation5 + $0x25c] sm:$0xff] }
 0x116   :  { %1636 = vmatprep.subr.bf16.mxu0 %v1635_v33 }
 0x117   :  { %1662 = vmatpush3.bf16.msra.mxu1 %v1659_v29  ;;  %v591_v29 = vld [vmem:[#allocation5 + $0x254] sm:$0xff] }
 0x118   :  { %v1683_v31 = vpack.c.bf16 %v592_v30, %v591_v29 }
 0x119   :  { %1638 = vmatpush3.bf16.msra.mxu0 %v1635_v33  ;;  %v594_v33 = vld [vmem:[#allocation5 + $0x26c] sm:$0xff] }
 0x11a   :  { %1438 = vmatmul.mubr.msk.f32.vlgmr.msra.gmra.mrb[6].mxu1 %vm67_vm0, %v1883_v18  ;;  %1640 = vmatprep.subr.bf16.mxu0 %v1639_v36  ;;  %v760_v18 = vld [vmem:[#allocation5 + $0x285] sm:$0xff]  ;;  %v1687_v34 = vpack.c.bf16 %v594_v33, %v593_v32 }
 0x11b   :  { %v1695_v50 = vpack.c.bf16 %v761_v48, %v760_v18 }
 0x11d   :  { %1642 = vmatpush3.bf16.msra.mxu0 %v1639_v36  ;;  %1696 = vmatprep.subr.bf16.mxu1 %v1695_v50  ;;  %v596_v36 = vld [vmem:[#allocation5 + $0x27c] sm:$0xff] }
 0x11e   :  { %1644 = vmatprep.subr.bf16.mxu0 %v1643_v39  ;;  %1698 = vmatpush3.bf16.msra.mxu1 %v1695_v50  ;;  %v1691_v37 = vpack.c.bf16 %v596_v36, %v595_v35  ;;  %v858_v50 = vld [vmem:[#allocation5 + $0x316] sm:$0xff] }
 0x11f   :  { %1700 = vmatprep.subr.bf16.mxu1 %v1699_v52 }
 0x121   :  { %1646 = vmatpush3.bf16.msra.mxu0 %v1643_v39  ;;  %v774_v39 = vld [vmem:[#allocation5 + $0x2f5] sm:$0xff] }
 0x122   :  { %1648 = vmatprep.subr.bf16.mxu0 %v1647_v41  ;;  %1702 = vmatpush3.bf16.msra.mxu1 %v1699_v52  ;;  %v1723_v40 = vpack.c.bf16 %v775_v5, %v774_v39  ;;  %v1731_v52 = vpack.c.bf16 %v859_v51, %v858_v50 }
 0x123   :  { %1704 = vmatprep.subr.bf16.mxu1 %v1703_v55 }
 0x125   :  { %1650 = vmatpush3.bf16.msra.mxu0 %v1647_v41  ;;  %v856_v41 = vld [vmem:[#allocation5 + $0x306] sm:$0xff] }
 0x126   :  { %1652 = vmatprep.subr.bf16.mxu0 %v1651_v44  ;;  %1706 = vmatpush3.bf16.msra.mxu1 %v1703_v55  ;;  %v1727_v43 = vpack.c.bf16 %v857_v42, %v856_v41 }
 0x127   :  { %1708 = vmatprep.subr.bf16.mxu1 %v1707_v58 }
 0x129   :  { %1654 = vmatpush3.bf16.msra.mxu0 %v1651_v44 }
 0x12a   :  { %1664 = vmatprep.subr.bf16.mxu0 %v1663_v47  ;;  %1710 = vmatpush3.bf16.msra.mxu1 %v1707_v58  ;;  %v942_v58 = vlaneseq }
 0x12b   :  { %1712 = vmatprep.subr.bf16.mxu1 %v1711_v61 }
 0x12c   :  { %v943_v59 = vshrl.u32 %v942_v58, 7 }
 0x12e   :  { %1714 = vmatpush3.bf16.msra.mxu1 %v1711_v61  ;;  %v944_v60 = vadd.s32 8, %v943_v59  ;;  %v946_v61 = vand.u32 127, %v942_v58  ;;  %v956_v62 = vand.u32 1, %v943_v59 }
 0x12f   :  { %1716 = vmatprep.subr.bf16.mxu1 %v1715_v0 }
 0x130   :  { %v957_v63 = vand.u32 1, %v944_v60  ;;  %vm958_vm1 = vcmp.eq.s32.totalorder %v956_v62, %v946_v61  ;;  %v948_v1 = vand.u32 7, %v944_v60  ;;  %v949_v2 = vshra.s32 %v946_v61, 1 }
 0x132   :  { %1718 = vmatpush3.bf16.msra.mxu1 %v1715_v0  ;;  %vm959_vm2 = vcmp.eq.s32.totalorder %v957_v63, %v946_v61  ;;  %v1833_v0 = vmov 1.0|1.0   ;;  %vm951_vm4 = vcmp.eq.s32.totalorder %v948_v1, %v949_v2 }
 0x133   :  { %1720 = vmatprep.subr.bf16.mxu1 %v1719_v3  ;;  %vm1735_vm3 = vmpackc.low %vm959_vm2, %vm958_vm1 }
 0x136   :  { %1722 = vmatpush3.bf16.msra.mxu1 %v1719_v3  ;;  %v947_v3 = vand.u32 7, %v943_v59 }
 0x137   :  { %1724 = vmatprep.subr.bf16.mxu1 %v1723_v40 }
 0x138   :  { %vm950_vm5 = vcmp.eq.s32.totalorder %v947_v3, %v949_v2 }
 0x13a   :  { %1726 = vmatpush3.bf16.msra.mxu1 %v1723_v40 }
 0x13b   :  { %1728 = vmatprep.subr.bf16.mxu1 %v1727_v43 }
 0x1dd   :  { %v1347_v4 = vpop.f32.mrb[2].mxu1 }
 0x1de   :  { %v1901_v6 = vpop.f32.mrb[3].mxu1 }
 0x1e5   :  { %v1393_v8 = vpop.f32.mrb[4].mxu1 }
 0x1e6   :  { %v490_v11 = vpop.f32.mrb[5].mxu1  ;;  %v496_v13 = vadd.f32 %v1393_v8, %v1148_v7 }
 0x1e7   :  { %v491_v12 = vadd.f32 %v1148_v7, %v490_v11 }
 0x1e9   :  { %1426 = vmatprep.mubr.f32.mxu0 %v491_v12  ;;  %v1835_v12 = vmov 0.0|0.0  }
 0x1ea   :  { %1427 = vmatmul.mubr.f32.vlgmr.msra.gmra.mrb[2].mxu0 %v496_v13  ;;  %v1044_v13 = vshra.s32 %v946_v61, 3 }
 0x1eb   :  { %1666 = vmatpush3.bf16.msra.mxu0 %v1663_v47 }
 0x1ec   :  { %1668 = vmatprep.subr.bf16.mxu0 %v1667_v14  ;;  %vm1045_vm8 = vcmp.eq.s32.totalorder %v1044_v13, %v943_v59 }
 0x1ed   :  { %v1439_v22 = vpop.f32.mrb[6].mxu1 }
 0x1ee   :  { %v667_v23 = vpop.f32.mrb[7].mxu1  ;;  %v673_v38 = vadd.f32 %v1439_v22, %v1151_v19 }
 0x1ef   :  { %1670 = vmatpush3.bf16.msra.mxu0 %v1667_v14  ;;  %v668_v24 = vadd.f32 %v1151_v19, %v667_v23  ;;  %v1162_v19 = vld [vmem:[#allocation5 + $0x326] ss:$0 sm:$0xff] }
 0x1f0   :  { %1672 = vmatprep.subr.bf16.mxu0 %v1671_v17 }
 0x1f1   :  { %1472 = vmatprep.mubr.f32.mxu0 %v668_v24 }
 0x1f3   :  { %1674 = vmatpush3.bf16.msra.mxu0 %v1671_v17 }
 0x1f4   :  { %1676 = vmatprep.subr.bf16.mxu0 %v1675_v25 }
 0x1f7   :  { %1678 = vmatpush3.bf16.msra.mxu0 %v1675_v25 }
 0x1f8   :  { %1680 = vmatprep.subr.bf16.mxu0 %v1679_v28 }
 0x1fb   :  { %1682 = vmatpush3.bf16.msra.mxu0 %v1679_v28 }
 0x1fc   :  { %1684 = vmatprep.subr.bf16.mxu0 %v1683_v31 }
 0x1ff   :  { %1686 = vmatpush3.bf16.msra.mxu0 %v1683_v31 }
 0x200   :  { %1688 = vmatprep.subr.bf16.mxu0 %v1687_v34 }
 0x203   :  { %1690 = vmatpush3.bf16.msra.mxu0 %v1687_v34 }
 0x204   :  { %1692 = vmatprep.subr.bf16.mxu0 %v1691_v37 }
 0x207   :  { %1694 = vmatpush3.bf16.msra.mxu0 %v1691_v37 }
 0x20a   :  { %1473 = vmatmul.mubr.f32.vlgmr.msra.gmra.mrb[2].mxu0 %v673_v38 }
 0x2dd   :  { %v1474_v44 = vpop.f32.mrb[2].mxu0 }
 0x2de   :  { %v1742_v45 = vadd.f32 %v1474_v44, %v1347_v4  ;;  %v742_v47 = vpop.f32.mrb[3].mxu0  ;;  %v1834_v4 = vmov 0.0  }
 0x2df   :  { %v1743_v18 = vadd.f32 %v742_v47, %v1901_v6  ;;  %v953_v6 = vsel %vm951_vm4, 1.0, %v1834_v4  ;;  %v952_v7 = vsel %vm950_vm5, 1.0, %v1834_v4  ;;  %v1046_v17 = vsel %vm1045_vm8, 1.0, %v1834_v4 }
 0x2e0   :  { %v759_v49 = vadd.f32 %v1742_v45, %v1154_v46 }
 0x2e1   :  { %v758_v48 = vadd.f32 %v1743_v18, %v1154_v46 }
 0x2e3   :  { %1507 = vmatprep.mubr.f32.mxu1 %v758_v48 }
 0x2e4   :  { %1508 = vmatmul.mubr.f32.vlgmr.msra.gmra.mrb[8].mxu1 %v759_v49 }
 0x2e5   :  { %1730 = vmatpush3.bf16.msra.mxu1 %v1727_v43 }
 0x2e6   :  { %1732 = vmatprep.subr.bf16.mxu1 %v1731_v52 }
 0x2e9   :  { %1734 = vmatpush3.bf16.msra.mxu1 %v1731_v52 }
 0x2ea   :  { %1736 = vmatprep.subr.msk.bf16.mxu1 %vm1735_vm3, %v1833_v0 }
 0x3b7   :  { %v1509_v54 = vpop.f32.mrb[8].mxu1 }
 0x3b8   :  { %v847_v55 = vpop.f32.mrb[9].mxu1  ;;  %v853_v57 = vadd.f32 %v1509_v54, %v1155_v53 }
 0x3b9   :  { %v848_v56 = vadd.f32 %v1155_v53, %v847_v55 }
 0x3bb   :  { %1518 = vmatprep.mubr.msk.f32.mxu1 %vm67_vm0, %v848_v56 }
 0x3bc   :  { %1519 = vmatmul.mubr.msk.f32.vlgmr.msra.gmra.mrb[10].mxu1 %vm67_vm0, %v853_v57 }
 0x3bd   :  { %1738 = vmatpush3.bf16.msk.msra.mxu1 %vm1735_vm3, %v1833_v0 }
 0x3be   :  { %1739 = vmatprep.subr.bf16.mxu1 %v1835_v12 }
 0x48f   :  { %v1520_v8 = vpop.f32.mrb[10].mxu1 }
 0x490   :  { %v955_v9 = vmul.f32 %v1520_v8, %v953_v6  ;;  %v933_v10 = vpop.f32.mrb[11].mxu1 }
 0x491   :  { %v954_v11 = vmul.f32 %v952_v7, %v933_v10 }
 0x493   :  { %1525 = vmatprep.mubr.msk.f32.mxu1 %vm962_vm6, %v954_v11 }
 0x494   :  { %1526 = vmatmul.mubr.msk.f32.vlgmr.msra.gmra.mrb[12].mxu1 %vm962_vm6, %v955_v9 }
 0x495   :  { %1532 = vmatprep.mubr.msk.f32.mxu1 %vm1836_vm7, %v1834_v4 }
 0x567   :  { %v1527_v14 = vpop.f32.mrb[12].mxu1 }
 0x568   :  { %v1035_v15 = vpop.f32.mrb[13].mxu1 }
 0x569   :  { %v1740_v16 = vpack.c.bf16 %v1527_v14, %v1035_v15 }
 0x56b   :  { %1741 = vmatpush3.bf16.msra.mxu1 %v1740_v16 }
 0x56e   :  { %1533 = vmatmul.mubr.msk.f32.vlgmr.msra.gmra.mrb[14].mxu1 %vm962_vm6, %v1046_v17 }
 0x641   :  { %v1120_v20 = vpop.f32.mrb[14].mxu1 }
 0x642   :  { %v1121_v21 = vadd.f32 %v1162_v19, %v1120_v20  ;;  %v1534_v22 = vpop.f32.mrb[15].mxu1 }
 0x644   :  { %1125 = vst.msk [vmem:[#allocation7] sm:$0x3] %vm1124_vm9, %v1121_v21 }
 0x645   :  { %1812 = shalt.err (!%p1809_p6)
}
 0x646   :  { %s1813_s10 = scalar_lea.hbm %s1920_s2, 32 }
 0x647   :  { %p1814_p7 = scmp.ne.s32.totalorder %s1920_s2, %s1813_s10  ;;  %p1817_p8 = scmp.lt.u32.totalorder %s1813_s10, %s1920_s2 }
 0x649   :  { %p1819_p9 = pnand %p1817_p8, %p1814_p7 }
 0x64b   :  { %1822 = shalt.err (!%p1819_p9)
}
 0x64c   :  { %1135 = dma.vmem_to_hbm [thread:$0]  %s1133_s6, 32, %s1920_s2, [#allocation4]  }
 0x64d   :  { %1827 = dma.done.wait [#allocation4], 32  }
 0x64e   :  { %1828 = vsyncadd [#allocation4], 4294967264 }
 0x64f   :  { %1139 = vsyncpa [#allocation3], 1 }
 0x650   :  { %1140 = vsyncpa [#allocation6], 1 }
 0x651   :  { %1141 = vsyncpa [#allocation4], 1 }

</bundles_post_ra>
